<compile_context>
chip_gen: v6e
topology: v6e:2x2x1
jax: 0.10.0
libtpu: 0.0.40
codegen_flags: <defaults>
</compile_context>

<pallas_src>
import jax
import jax.numpy as jnp
from jax.experimental import pallas as pl
from jax.experimental.pallas import tpu as pltpu

EPS = 1e-5  # PyTorch LayerNorm default eps
MIN_BIN, MAX_BIN, NO_BINS = 3.25, 20.75, 15


def _vmem_capacity_bytes():
    """Physical per-TensorCore VMEM; conservative v7x (64 MiB) fallback."""
    try:
        cap = int(pltpu.get_tpu_info().vmem_capacity_bytes)
        if cap > 0:
            return cap
    except Exception:
        pass
    return 64 * 1024 * 1024


def _legal_tiles(n):
    # Divisors of n that satisfy the sublane constraint (multiple of 8, or the
    # full extent).
    return [t for t in range(1, n + 1) if n % t == 0 and (t % 8 == 0 or t == n)]


def _choose_row_tile(batch, n, c, budget_bytes, min_steps=2):
    """Largest legal row tile within budget that still yields >= min_steps
    total grid steps (so both v7x TensorCores get work)."""
    cands = _legal_tiles(n)
    fitting = [t for t in cands if t * c * 4 <= budget_bytes] or [min(cands)]
    good = [t for t in fitting if batch * (n // t) >= min_steps]
    return max(good) if good else max(fitting)


def _choose_pair_tiles(batch, n, c, budget_bytes, min_steps=2):
    """(TILE_I, TILE_J) for the z blocks. Prefers: enough grid steps for two
    TensorCores, then the largest block within budget (fewest steps -> least
    per-step overhead), then a wider TILE_J (longer contiguous HBM runs)."""
    cands = _legal_tiles(n)
    pairs = [(ti, tj) for ti in cands for tj in cands]
    fitting = [p for p in pairs if p[0] * p[1] * c * 4 <= budget_bytes]
    if not fitting:
        # Column tiling bounds VMEM independent of N, so this only triggers for
        # absurdly large c_z; take the smallest legal block.
        return min(cands), min(cands)

    def rank(p):
        ti, tj = p
        steps = batch * (n // ti) * (n // tj)
        return (steps >= min_steps, ti * tj, tj)

    return max(fitting, key=rank)


def ln_m_kernel(m_ref, g_ref, b_ref, o_ref):
    # m_ref: (1, tile_m, c_m) -- LayerNorm over the last (lane) axis.
    m = m_ref[0].astype(jnp.float32)                       # (tile_m, c_m)
    c = m.shape[-1]
    mu = jnp.sum(m, axis=-1, keepdims=True) * (1.0 / c)
    mc = m - mu
    var = jnp.sum(mc * mc, axis=-1, keepdims=True) * (1.0 / c)
    mn = mc * jax.lax.rsqrt(var + EPS)
    o_ref[0] = (mn * g_ref[...] + b_ref[...]).astype(o_ref.dtype)


def z_kernel(z_ref, si_ref, sj_ref, g_ref, edges_ref, w_ref, bias_ref, o_ref):
    # z_ref    : (1, TILE_I, TILE_J, c_z)  row x column tile of the pair rep
    # si_ref   : (1, TILE_I, 1)            s[i] = sum_k x[i, k] for this row tile
    # sj_ref   : (1, 1, TILE_J, 1)         s[j] for this column tile
    # g_ref    : (1, 1, c_z)               LayerNorm gamma
    # edges_ref: (1, 1, NO_BINS + 1)       ascending squared bin edges (+1e9 cap)
    # w_ref    : (NO_BINS + 1, c_z)        adjacent-difference-folded projection
    # bias_ref : (1, 1, c_z)               LayerNorm beta + Linear bias, combined
    z = z_ref[0].astype(jnp.float32)                       # (TI, TJ, C)
    c = z.shape[-1]

    # Two-pass LayerNorm statistics (same reduce count as the single-pass form,
    # better conditioned when |mu| >> sigma).
    mu = jnp.sum(z, axis=-1, keepdims=True) * (1.0 / c)
    zc = z - mu
    var = jnp.sum(zc * zc, axis=-1, keepdims=True) * (1.0 / c)
    zn = zc * jax.lax.rsqrt(var + EPS) * g_ref[...]
    # TODO(synk): if a v7x bundle dump shows the two cross-lane reduces binding,
    # form the sums with an MXU dot against a (c_z, 1) ones vector instead.

    # d[i, j] = sum_k (x[i,k] - x[j,k]) = s[i] - s[j]  (matches torch.sum(diff, -1))
    si = si_ref[0].astype(jnp.float32)                     # (TI, 1)
    sj = sj_ref[0][:, :, 0].astype(jnp.float32)            # (1, TJ)
    d = (si - sj)[..., None]                               # (TI, TJ, 1)

    # ONE ascending comparison family; the adjacent difference that turns it
    # into a one-hot is folded into w_ref (W'[0]=w0, W'[k]=wk-wk-1, W'[15]=-w14),
    # so the extra lane-padded `binned` intermediate and its VPU subtract are gone.
    # (Only differs from the strict-both-sides reference when d lands exactly
    # on a bin edge -- measure zero.)
    gt = (d > edges_ref[...]).astype(jnp.float32)          # (TI, TJ, 16)
    # TODO(synk): gt could be fed to the MXU as bf16 (values are exactly 0/1) to
    # halve its lane-padded footprint; kept f32 so the folded-weight projection
    # stays faithful to the f32 reference at 1e-4 tolerance.
    emb = jax.lax.dot_general(
        gt, w_ref[...],
        dimension_numbers=(((2,), (0,)), ((), ())),
        preferred_element_type=jnp.float32,
    )                                                      # (TI, TJ, C)

    o_ref[0] = (zn + emb + bias_ref[...]).astype(o_ref.dtype)


def recycling_embedder(m, z, x, params, *, donate_z=False):
    B, N, c_m = m.shape
    c_z = z.shape[-1]

    cap = _vmem_capacity_bytes()
    vmem_limit = (cap * 3) // 4              # 48 MiB on v7x, 96 MiB on v5e/v6e
    z_budget = max(cap // 16, 1 << 20)       # ~4 MiB (v7x) / ~8 MiB (v5e/v6e) per z block
    m_budget = min(z_budget, 2 << 20)

    tile_m = _choose_row_tile(B, N, c_m, m_budget)
    tile_i, tile_j = _choose_pair_tiles(B, N, c_z, z_budget)

    g_m = params["ln_m_gamma"].reshape(1, c_m)
    b_m = params["ln_m_beta"].reshape(1, c_m)
    g_z = params["ln_z_gamma"].reshape(1, 1, c_z)
    # Combined epilogue bias: LayerNorm beta + Linear bias (one add, one DMA).
    bias_z = (params["ln_z_beta"] + params["linear_b"]).reshape(1, 1, c_z)

    # Fold the one-hot adjacent difference into the projection weights:
    #   onehot @ w  ==  gt @ W'  with  W' = [w0, w1 - w0, ..., w14 - w13, -w14].
    w = params["linear_w"]                                  # (NO_BINS, c_z)
    w_fold = jnp.concatenate([w[:1], w[1:] - w[:-1], -w[-1:]], axis=0)  # (16, c_z)

    v_bins = jnp.linspace(MIN_BIN, MAX_BIN, NO_BINS, dtype=x.dtype)
    edges = jnp.concatenate([v_bins ** 2, jnp.array([1e9], dtype=x.dtype)])
    edges = edges.reshape(1, 1, NO_BINS + 1)

    # The pairwise "distance" is separable: precompute s = sum_k x[., k] once in
    # plain JAX (tiny) instead of shipping the awkward (N, 3) tensor per step.
    s = jnp.sum(x, axis=-1)                                 # (B, N)
    s_rows = s.reshape(B, N, 1)
    s_cols = s.reshape(B, 1, N, 1)

    m_out = pl.pallas_call(
        ln_m_kernel,
        out_shape=jax.ShapeDtypeStruct((B, N, c_m), m.dtype),
        grid_spec=pltpu.PrefetchScalarGridSpec(
            num_scalar_prefetch=0,
            grid=(B, N // tile_m),
            in_specs=[
                pl.BlockSpec((1, tile_m, c_m), lambda b, i: (b, i, 0)),
                pl.BlockSpec((1, c_m), lambda b, i: (0, 0)),
                pl.BlockSpec((1, c_m), lambda b, i: (0, 0)),
            ],
            out_specs=pl.BlockSpec((1, tile_m, c_m), lambda b, i: (b, i, 0)),
        ),
        compiler_params=pltpu.CompilerParams(
            dimension_semantics=("parallel", "parallel")),
    )(m, g_m, b_m)

    # TODO(synk): if a v7x profile shows the grid not actually splitting across
    # the two TensorCores with plain "parallel", switch the row axis to
    # pltpu.CORE_PARALLEL.
    z_out = pl.pallas_call(
        z_kernel,
        out_shape=jax.ShapeDtypeStruct((B, N, N, c_z), z.dtype),
        grid_spec=pltpu.PrefetchScalarGridSpec(
            num_scalar_prefetch=0,
            grid=(B, N // tile_i, N // tile_j),
            in_specs=[
                pl.BlockSpec((1, tile_i, tile_j, c_z), lambda b, i, j: (b, i, j, 0)),
                pl.BlockSpec((1, tile_i, 1), lambda b, i, j: (b, i, 0)),
                pl.BlockSpec((1, 1, tile_j, 1), lambda b, i, j: (b, 0, j, 0)),
                pl.BlockSpec((1, 1, c_z), lambda b, i, j: (0, 0, 0)),
                pl.BlockSpec((1, 1, NO_BINS + 1), lambda b, i, j: (0, 0, 0)),
                pl.BlockSpec((NO_BINS + 1, c_z), lambda b, i, j: (0, 0)),
                pl.BlockSpec((1, 1, c_z), lambda b, i, j: (0, 0, 0)),
            ],
            out_specs=pl.BlockSpec((1, tile_i, tile_j, c_z),
                                   lambda b, i, j: (b, i, j, 0)),
        ),
        compiler_params=pltpu.CompilerParams(
            dimension_semantics=("parallel", "parallel", "parallel"),
            vmem_limit_bytes=vmem_limit,
        ),
        # In-place z update when the caller donates its buffer (avoids a second
        # B*N*N*c_z HBM allocation; XLA copies if z is not actually donated).
        input_output_aliases={0: 0} if donate_z else {},
    )(z, s_rows, s_cols, g_z, edges, w_fold, bias_z)

    return m_out, z_out


def reference(m, z, x, params):
    # Pure-JAX reference mirroring the PyTorch forward.
    def ln(t, g, b):
        mu = jnp.mean(t, axis=-1, keepdims=True)
        var = jnp.mean((t - mu) ** 2, axis=-1, keepdims=True)
        return (t - mu) / jnp.sqrt(var + EPS) * g + b

    m_out = ln(m, params["ln_m_gamma"], params["ln_m_beta"])
    z_n = ln(z, params["ln_z_gamma"], params["ln_z_beta"])

    v_bins = jnp.linspace(MIN_BIN, MAX_BIN, NO_BINS, dtype=x.dtype)
    sq = v_bins ** 2
    upper = jnp.concatenate([sq[1:], jnp.array([1e9], dtype=x.dtype)])
    d = jnp.sum(x[..., None, :] - x[..., None, :, :], axis=-1, keepdims=True)  # (B,N,N,1)
    onehot = jnp.logical_and(d > sq, d < upper).astype(x.dtype)                # (B,N,N,15)
    emb = jnp.einsum("bijk,kc->bijc", onehot, params["linear_w"],
                     precision=jax.lax.Precision.HIGHEST) + params["linear_b"]
    return m_out, z_n + emb


if __name__ == "__main__":
    B, N, c_m, c_z = 2, 8, 32, 32

    key = jax.random.PRNGKey(0)
    ks = jax.random.split(key, 9)
    m = jax.random.normal(ks[0], (B, N, c_m), dtype=jnp.float32)
    z = jax.random.normal(ks[1], (B, N, N, c_z), dtype=jnp.float32)
    x = 10.0 * jax.random.normal(ks[2], (B, N, 3), dtype=jnp.float32)

    # Projection weights snapped to a 1/64 grid: the tiny bin->c_z matmul (and
    # its folded-weight telescoping) is then exact under any MXU pass count, so
    # the 1e-4 check exercises the algorithm rather than platform matmul precision.
    w_raw = 0.1 * jax.random.normal(ks[7], (NO_BINS, c_z), dtype=jnp.float32)
    linear_w = jnp.round(w_raw * 64.0) / 64.0

    params = {
        "ln_m_gamma": 1.0 + 0.1 * jax.random.normal(ks[3], (c_m,), dtype=jnp.float32),
        "ln_m_beta": 0.1 * jax.random.normal(ks[4], (c_m,), dtype=jnp.float32),
        "ln_z_gamma": 1.0 + 0.1 * jax.random.normal(ks[5], (c_z,), dtype=jnp.float32),
        "ln_z_beta": 0.1 * jax.random.normal(ks[6], (c_z,), dtype=jnp.float32),
        "linear_w": linear_w,
        "linear_b": 0.1 * jax.random.normal(ks[8], (c_z,), dtype=jnp.float32),
    }

    m_out, z_out = recycling_embedder(m, z, x, params)
    jax.block_until_ready((m_out, z_out))

    m_ref, z_ref = reference(m, z, x, params)
    assert m_out.shape == (B, N, c_m) and z_out.shape == (B, N, N, c_z)
    assert jnp.allclose(m_out, m_ref, atol=1e-4, rtol=1e-4)
    assert jnp.allclose(z_out, z_ref, atol=1e-4, rtol=1e-4)

    print("KERNEL_OK")
</pallas_src>

<mosaic_0001>
module attributes {stable_mosaic.version = 11 : i64} {
  func.func @ln_m_kernel(%arg0: i32, %arg1: i32, %arg2: memref<1x8x32xf32, #tpu.memory_space<vmem>>, %arg3: memref<1x32xf32, #tpu.memory_space<vmem>>, %arg4: memref<1x32xf32, #tpu.memory_space<vmem>>, %arg5: memref<1x8x32xf32, #tpu.memory_space<vmem>>) attributes {dimension_semantics = [#tpu.dimension_semantics<parallel>, #tpu.dimension_semantics<parallel>], iteration_bounds = array<i64: 2, 1>, scalar_prefetch = 0 : i64, scratch_operands = 0 : i64, tpu.core_type = #tpu.core_type<tc>, window_params = [{transform_indices = @transform_0, window_bounds = array<i64: 1, 8, 32>}, {pipeline_mode = #tpu.pipeline_mode<synchronous>, transform_indices = @transform_1, window_bounds = array<i64: 1, 32>}, {pipeline_mode = #tpu.pipeline_mode<synchronous>, transform_indices = @transform_2, window_bounds = array<i64: 1, 32>}, {transform_indices = @transform_3, window_bounds = array<i64: 1, 8, 32>}]} {
    %c0 = arith.constant 0 : index
    %c0_0 = arith.constant 0 : index
    %c0_1 = arith.constant 0 : index
    %0 = vector.load %arg2[%c0, %c0_0, %c0_1] : memref<1x8x32xf32, #tpu.memory_space<vmem>>, vector<1x8x32xf32>
    %1 = vector.shape_cast %0 : vector<1x8x32xf32> to vector<8x32xf32>
    %cst = arith.constant dense<0.000000e+00> : vector<8xf32>
    %2 = vector.multi_reduction <add>, %1, %cst [1] : vector<8x32xf32> to vector<8xf32>
    %3 = vector.shape_cast %2 : vector<8xf32> to vector<8x1xf32>
    %cst_2 = arith.constant 3.125000e-02 : f32
    %4 = vector.broadcast %cst_2 : f32 to vector<8x1xf32>
    %5 = arith.mulf %3, %4 : vector<8x1xf32>
    %6 = vector.broadcast %5 : vector<8x1xf32> to vector<8x32xf32>
    %7 = arith.subf %1, %6 : vector<8x32xf32>
    %8 = arith.mulf %7, %7 : vector<8x32xf32>
    %cst_3 = arith.constant dense<0.000000e+00> : vector<8xf32>
    %9 = vector.multi_reduction <add>, %8, %cst_3 [1] : vector<8x32xf32> to vector<8xf32>
    %10 = vector.shape_cast %9 : vector<8xf32> to vector<8x1xf32>
    %cst_4 = arith.constant 3.125000e-02 : f32
    %11 = vector.broadcast %cst_4 : f32 to vector<8x1xf32>
    %12 = arith.mulf %10, %11 : vector<8x1xf32>
    %cst_5 = arith.constant 9.99999974E-6 : f32
    %13 = vector.broadcast %cst_5 : f32 to vector<8x1xf32>
    %14 = arith.addf %12, %13 : vector<8x1xf32>
    %15 = math.rsqrt %14 : vector<8x1xf32>
    %16 = vector.broadcast %15 : vector<8x1xf32> to vector<8x32xf32>
    %17 = arith.mulf %7, %16 : vector<8x32xf32>
    %c0_6 = arith.constant 0 : index
    %c0_7 = arith.constant 0 : index
    %18 = vector.load %arg3[%c0_6, %c0_7] : memref<1x32xf32, #tpu.memory_space<vmem>>, vector<1x32xf32>
    %19 = vector.broadcast %18 : vector<1x32xf32> to vector<8x32xf32>
    %20 = arith.mulf %17, %19 : vector<8x32xf32>
    %c0_8 = arith.constant 0 : index
    %c0_9 = arith.constant 0 : index
    %21 = vector.load %arg4[%c0_8, %c0_9] : memref<1x32xf32, #tpu.memory_space<vmem>>, vector<1x32xf32>
    %22 = vector.broadcast %21 : vector<1x32xf32> to vector<8x32xf32>
    %23 = arith.addf %20, %22 : vector<8x32xf32>
    %c0_10 = arith.constant 0 : index
    %c0_11 = arith.constant 0 : index
    %c0_12 = arith.constant 0 : index
    %24 = vector.load %arg5[%c0_10, %c0_11, %c0_12] : memref<1x8x32xf32, #tpu.memory_space<vmem>>, vector<1x8x32xf32>
    %25 = vector.shape_cast %24 : vector<1x8x32xf32> to vector<8x32xf32>
    %26 = vector.shape_cast %23 : vector<8x32xf32> to vector<1x8x32xf32>
    tpu.vector_store %arg5[%c0_10, %c0_11, %c0_12], %26 {strides = array<i32>} : memref<1x8x32xf32, #tpu.memory_space<vmem>>, vector<1x8x32xf32>,
    return
  }
  func.func @transform_0(%arg0: i32, %arg1: i32) -> (i32, i32, i32) {
    %c0_i32 = arith.constant 0 : i32
    %c0_i32_0 = arith.constant 0 : i32
    return %arg0, %arg1, %c0_i32 : i32, i32, i32
  }
  func.func @transform_1(%arg0: i32, %arg1: i32) -> (i32, i32) {
    %c0_i32 = arith.constant 0 : i32
    %c0_i32_0 = arith.constant 0 : i32
    %c0_i32_1 = arith.constant 0 : i32
    return %c0_i32, %c0_i32_0 : i32, i32
  }
  func.func @transform_2(%arg0: i32, %arg1: i32) -> (i32, i32) {
    %c0_i32 = arith.constant 0 : i32
    %c0_i32_0 = arith.constant 0 : i32
    %c0_i32_1 = arith.constant 0 : i32
    return %c0_i32, %c0_i32_0 : i32, i32
  }
  func.func @transform_3(%arg0: i32, %arg1: i32) -> (i32, i32, i32) {
    %c0_i32 = arith.constant 0 : i32
    %c0_i32_0 = arith.constant 0 : i32
    return %arg0, %arg1, %c0_i32 : i32, i32, i32
  }
}

</mosaic_0001>

<bundles_post_ra>
// kernel: tpu_custom_call.1
= control target key start
LH: loop header
LB: loop body
LE: loop exit
PB: predicated region body
PF: predicated region fallthrough
CT: control target
= control target key end

     0   :  { %8 = vsyncpa [#allocation3], 0  ;;  %s684_s0 = inlined_call_operand.hbm [shape: f32[2,8,32], index: 0, kind: input, shape index: {}]   ;;  %s685_s1 = inlined_call_operand.vmem [shape: f32[1,32], index: 1, kind: input, shape index: {}]   ;;  %s686_s2 = inlined_call_operand.vmem [shape: f32[1,32], index: 2, kind: input, shape index: {}]   ;;  %s687_s3 = inlined_call_operand.hbm [shape: f32[2,8,32], index: 3, kind: output, shape index: {}]  }
   0x1   :  { %10 = vsyncpa [#allocation3 + $0x1], 0 }
   0x2   :  { %11 = vsyncpa [#allocation4], 0 }
   0x3   :  { %13 = vsyncpa [#allocation4 + $0x1], 0  ;;  %s541_s12 = smov 0   ;;  %s543_s13 = smov 0  }
   0x4   :  { %s545_s14 = smov 0   ;;  %s547_s15 = smov 0  }
   0x5   :  { %s549_s16 = smov 0   ;;  %s551_s17 = smov 0  }
   0x6 LB: > { %s330_s18 = sadd.s32 4294967295, %s517_s17   ;;  %s331_s19 = sadd.s32 4294967294, %s517_s17   ;;  %s517_s17 = sphi %s551_s17, %s19_s17   ;;  %s513_s16 = sphi %s549_s16, %s699_s16   ;;  %s509_s15 = sphi %s547_s15, %s698_s15   ;;  %s505_s14 = sphi %s545_s14, %s697_s14   ;;  %s501_s13 = sphi %s543_s13, %s696_s13   ;;  %s497_s12 = sphi %s541_s12, %s695_s12  }
   0x7   : > { %s31_s20 = sadd.s32 1, %s513_s16  ;;  %s40_s21 = sadd.s32 1, %s505_s14 }
   0x8   : > { %p33_p0 = scmp.ge.s32.totalorder %s31_s20, 2  ;;  %p47_p1 = scmp.ne.s32.totalorder %s505_s14, %s501_s13 }
   0x9   : > { %p48_p2 = scmp.eq.s32.totalorder %s517_s17, 0  ;;  %p53_p3 = scmp.ne.s32.totalorder %s501_s13, %s497_s12 }
   0xa   : > { %s701_s20 = smov (%p33_p0, %s31_s20), 0  ;;  %p54_p5 = scmp.eq.s32.totalorder %s330_s18, 0 }
   0xb   : > { %p582_p4 = por %p48_p2, %p47_p1  ;;  %s35_s23 = ssub.s32 %s513_s16, %s701_s20 }
   0xc   : > { %p121_p6 = scmp.eq.s32.totalorder %s330_s18, 1  ;;  %p38_p7 = scmp.eq.s32.totalorder %s35_s23, 0 }
   0xd   : > { %p588_p8 = por %p54_p5, %p53_p3  ;;  %p127_p10 = scmp.eq.s32.totalorder %s331_s19, 1 }
   0xe   : > { %p592_p9 = por %p121_p6, %p47_p1  ;;  %p357_p13 = scmp.lt.s32.totalorder %s517_s17, 2 }
   0xf   : > { %s597_s26 = scalar_select %p38_p7, %s505_s14, %s40_s21  }
  0x10   : > { %p599_p11 = por %p127_p10, %p53_p3  ;;  %s153_s28 = sand.u32 1, %s505_s14  }
  0x11   : > { %s334_s29 = sshll.u32 %s153_s28, 3  ;;  %s335_s30 = sshll.u32 %s513_s16, 7 }
  0x12   : > { %s691_s27 = scalar_select %p599_p11, 1, 0 }
  0x13   : > { %s163_s6 = scalar_lea.hbm %s684_s0, %s335_s30  ;;  %s157_s7 = scalar_lea.vmem [#allocation2], %s334_s29 }
  0x14   : > { %s165_s8 = sshll.u32 %s157_s7, 4  ;;  %p612_p0 = pnand %p357_p13, %p582_p4  ;;  %s166_s8 = int_to_ptr.vmem [resolvable:$true] %s165_s8 }
  0x15   : > { %p336_p1 = scmp.ge.s32.totalorder %s517_s17, 1  ;;  %p170_p2 = scmp.lt.s32.totalorder %s517_s17, 3 }
  0x16   : > { %s154_s10 = scalar_lea.sflag [#allocation3], %s153_s28  ;;  %p411_p3 = pneg %p612_p0 }
  0x17   : > { %s422_s11 = scalar_lea.vmem %s166_s8, 128  ;;  %s519_s18 = smov [#allocation2]  }
  0x18   : > { %p423_p5 = scmp.ne.s32.totalorder %s166_s8, %s422_s11  ;;  %s427_s19 = sshll.u32 %s519_s18, 4  ;;  %s428_s19 = int_to_ptr.vmem [resolvable:$false] %s427_s19 }
  0x19   : > { %s429_s21 = scalar_lea.vmem %s428_s19, 256  ;;  %p430_p10 = scmp.lt.s32.totalorder %s166_s8, %s428_s19 }
  0x1a   : > { %p425_p6 = pnand %p423_p5, %p411_p3  ;;  %p431_p12 = scmp.lt.s32.totalorder %s429_s21, %s422_s11 }
  0x1c   : > { %p426_p7 = pneg %p425_p6  ;;  %p432_p4 = por %p431_p12, %p430_p10 }
  0x1e   : > { %p433_p13 = pnand %p432_p4, %p426_p7 }
  0x20   : > { %436 = shalt.err (!%p433_p13)
}
  0x21   : > { %352 = dma.hbm_to_vmem [thread:$0]  (!%p612_p0), %s163_s6, 128, %s166_s8, %s154_s10  }
  0x22   : > { %p171_p11 = pnand %p336_p1, %p170_p2 }
  0x23   : > { %s627_s22 = sand.u32 (!%p171_p11), 1, %s501_s13  }
  0x24   : > { %174 = sbr.rel (%p171_p11) target bundleno = 364 (0x16c), region = 32  ;;  %s337_s23 = sshll.u32 (!%p171_p11), %s627_s22, 3 }
  0x25   : > { %s177_s28 = scalar_lea.sflag (!%p171_p11), [#allocation3], %s627_s22  ;;  %s180_s29 = scalar_lea.vmem (!%p171_p11), [#allocation2], %s337_s23 }
  0x29   : > { %488 = dma.done.wait (%p588_p8), %s177_s28, 128  }
  0x2a   : > { %490 = vsyncadd (%p588_p8), %s177_s28, 4294967168  ;;  %vm204_vm0 = vcmask 261120   ;;  %v203_v0 = vld [vmem:[%s180_s29] sm:$0xff]  ;;  %s342_s6 = sshll.u32 %s509_s15, 7  ;;  %s202_s7 = scalar_lea.vmem [#allocation5], %s337_s23 }
  0x2b   : > { %v205_v1 = vsel %vm204_vm0, %v203_v0, 0.0  ;;  %v339_v11 = vld [vmem:[%s685_s1] ss:$0 sm:$0xff]  ;;  %s250_s8 = sshll.u32 %s202_s7, 4  ;;  %s248_s11 = scalar_lea.hbm %s687_s3, %s342_s6  ;;  %s251_s8 = int_to_ptr.vmem [resolvable:$true] %s250_s8 }
  0x2c   : > { %206 = vadd.xlane.f32.xlu0 %v205_v1  ;;  %v340_v13 = vld [vmem:[%s686_s2] ss:$0 sm:$0xff]  ;;  %s236_s18 = scalar_lea.sflag [#allocation4], %s627_s22  ;;  %s437_s19 = scalar_lea.vmem %s251_s8, 128 }
  0x2d   : > { %p438_p8 = scmp.ne.s32.totalorder %s251_s8, %s437_s19  ;;  %s520_s21 = smov [#allocation5]  }
  0x2e   : > { %s441_s28 = sshll.u32 %s520_s21, 4  ;;  %s442_s28 = int_to_ptr.vmem [resolvable:$false] %s441_s28 }
  0x2f   : > { %p439_p11 = pnand %p438_p8, %p592_p9  ;;  %s443_s15 = scalar_lea.vmem %s442_s28, 256 }
  0x30   : > { %p444_p0 = scmp.lt.s32.totalorder %s251_s8, %s442_s28  ;;  %p445_p1 = scmp.lt.s32.totalorder %s443_s15, %s437_s19 }
  0x31   : > { %p440_p12 = pneg %p439_p11 }
  0x32   : > { %p446_p2 = por %p445_p1, %p444_p0 }
  0x34   : > { %p447_p3 = pnand %p446_p2, %p440_p12 }
  0xb5   : > { %v207_v2 = vpop.xlane.xlu0 %206 }
  0xb6   : > { %v208_v3 = vmul.f32 0.03125, %v207_v2 }
  0xb8   : > { %v209_v4 = vsub.f32 %v203_v0, %v208_v3 }
  0xba   : > { %v210_v5 = vmul.f32 %v209_v4, %v209_v4 }
  0xbc   : > { %v211_v6 = vsel %vm204_vm0, %v210_v5, 0.0 }
  0xbd   : > { %212 = vadd.xlane.f32.xlu0 %v211_v6 }
 0x146   : > { %v213_v7 = vpop.xlane.xlu0 %212 }
 0x147   : > { %v214_v8 = vmul.f32 0.03125, %v213_v7 }
 0x149   : > { %v215_v9 = vadd.f32 1e-05, %v214_v8 }
 0x14b   : > { %407 = vrsqrt.f32 %v215_v9 }
 0x158   : > { %v408_v10 = vpop.eup %407 }
 0x159   : > { %v217_v12 = vmul.f32 %v408_v10, %v209_v4 }
 0x15b   : > { %v225_v14 = vmul.f32 %v339_v11, %v217_v12 }
 0x15d   : > { %v233_v15 = vadd.f32 %v340_v13, %v225_v14 }
 0x15f   : > { %234 = vst.msk [vmem:[%s202_s7] sm:$0xff] %vm204_vm0, %v233_v15 }
 0x160   : > { %450 = shalt.err (!%p447_p3)
}
 0x161   : > { %s451_s23 = scalar_lea.hbm %s248_s11, 128  ;;  %s455_s24 = scalar_lea.hbm %s687_s3, 256 }
 0x162   : > { %p452_p5 = scmp.ne.s32.totalorder %s248_s11, %s451_s23  ;;  %p456_p10 = scmp.lt.s32.totalorder %s248_s11, %s687_s3 }
 0x163   : > { %p457_p4 = scmp.lt.s32.totalorder %s455_s24, %s451_s23 }
 0x164   : > { %p453_p6 = pnand %p452_p5, %p592_p9 }
 0x165   : > { %p458_p13 = por %p457_p4, %p456_p10 }
 0x166   : > { %p454_p7 = pneg %p453_p6 }
 0x168   : > { %p459_p8 = pnand %p458_p13, %p454_p7 }
 0x16a   : > { %462 = shalt.err (!%p459_p8)
}
 0x16b   : > { %347 = dma.vmem_to_hbm [thread:$0]  (%p592_p9), %s251_s8, 128, %s248_s11, %s236_s18  }
 0x16c PF: > { %s262_s5 = sand.u32 1, %s497_s12   ;;  %p693_p11 = scmp.ne.s32.totalorder %s691_s27, 0 }
 0x16d   : > { %p694_p12 = scmp.ge.s32.totalorder %s517_s17, 2  ;;  %s263_s6 = scalar_lea.sflag [#allocation4], %s262_s5 }
 0x16f   : > { %p354_p0 = pnand %p694_p12, %p693_p11 }
 0x171   : > { %p355_p1 = pneg %p354_p0 }
 0x173   : > { %492 = dma.done.wait (%p355_p1), %s263_s6, 128  }
 0x174   : > { %494 = vsyncadd (%p355_p1), %s263_s6, 4294967168  ;;  %s19_s17 = sadd.s32 1, %s517_s17   ;;  %s695_s12 = smov %s501_s13 }
 0x175   : > { %p16_p2 = scmp.ge.s32.totalorder %s19_s17, 4   ;;  %s696_s13 = smov %s505_s14 }
 0x176   : > { %s697_s14 = smov %s597_s26  ;;  %s698_s15 = smov %s513_s16 }
 0x177   : > { %s699_s16 = smov %s701_s20  ;;  %18 = sbr.rel (!%p16_p2) target bundleno = 6 (0x6), region = 77 }
 0x17c   :  { %268 = vsyncpa [#allocation3], 1 }
 0x17d   :  { %270 = vsyncpa [#allocation3 + $0x1], 1 }
 0x17e   :  { %271 = vsyncpa [#allocation4], 1 }
 0x17f   :  { %273 = vsyncpa [#allocation4 + $0x1], 1 }

</bundles_post_ra>
